<compile_context>
chip_gen: v7x
topology: tpu7x:2x2x1
jax: 0.10.0
libtpu: 0.0.40
codegen_flags: <defaults>
</compile_context>

<pallas_src>
import functools

import jax
import jax.numpy as jnp
from jax.experimental import pallas as pl
from jax.experimental.pallas import tpu as pltpu


# ---------------------------------------------------------------------------
# VMEM sizing (generation-aware)
# ---------------------------------------------------------------------------

def _vmem_budget_and_limit():
    """Return (block_budget_bytes, vmem_limit_bytes, vmem_capacity_bytes)."""
    cap = None
    try:
        cap = int(pltpu.get_tpu_info().vmem_capacity_bytes)
    except Exception:
        cap = None
    if cap is not None and cap >= 128 * 1024 * 1024:
        # v5e / v6e: 128 MiB per TensorCore -> much larger fused blocks.
        return 80 * 1024 * 1024, 112 * 1024 * 1024, cap
    if cap is None:
        cap = 64 * 1024 * 1024
    # v7x (64 MiB) or unknown: conservative.
    return 32 * 1024 * 1024, 48 * 1024 * 1024, cap


# ---------------------------------------------------------------------------
# Kernels
# ---------------------------------------------------------------------------

def _bn_fused_kernel(x_ref, gamma_ref, beta_ref, o_ref, *, eps, inv_count):
    """Single pass: full (B, C_TILE, HW) channel block resident in VMEM.

    Stats from sum / sum-of-squares (no centered block copy retained); the
    output sweep re-reads the same block: y = x * scale + (beta - mean*scale).
    """
    x = x_ref[...].astype(jnp.float32)                       # (B, Ct, HW)
    s = jnp.sum(jnp.sum(x, axis=2, keepdims=True), axis=0, keepdims=True)
    sq = jnp.sum(jnp.sum(x * x, axis=2, keepdims=True), axis=0, keepdims=True)
    mean = s * inv_count                                     # (1, Ct, 1)
    var = jnp.maximum(sq * inv_count - mean * mean, 0.0)     # biased variance
    scale = gamma_ref[...].astype(jnp.float32) * jax.lax.rsqrt(var + eps)
    shift = beta_ref[...].astype(jnp.float32) - mean * scale
    o_ref[...] = (x * scale + shift).astype(o_ref.dtype)


def _bn_stats_kernel(x_ref, mean_ref, m2_ref, *, n_tile):
    """Streaming pass 1: per-channel running mean / M2 via Chan's parallel combine.

    Centered per-block statistics in f32 (numerically stable vs E[x^2]-mean^2);
    the rsqrt / scale / shift finalize lives in the wrapper on (C,)-sized arrays,
    keeping the pipelined inner loop branch-free.
    """
    b = pl.program_id(1)
    n = pl.program_id(2)
    n_blocks = pl.num_programs(2)

    @pl.when(jnp.logical_and(b == 0, n == 0))
    def _init():
        mean_ref[...] = jnp.zeros_like(mean_ref)
        m2_ref[...] = jnp.zeros_like(m2_ref)

    x = x_ref[...].astype(jnp.float32)                       # (1, Ct, Nt)
    blk_mean = jnp.sum(x, axis=2, keepdims=True) * (1.0 / n_tile)
    xc = x - blk_mean
    blk_m2 = jnp.sum(xc * xc, axis=2, keepdims=True)

    count_prev = (b * n_blocks + n).astype(jnp.float32) * n_tile
    count_new = count_prev + n_tile
    delta = blk_mean - mean_ref[...]
    mean_ref[...] = mean_ref[...] + delta * (n_tile / count_new)
    m2_ref[...] = (m2_ref[...] + blk_m2
                   + (delta * delta) * (count_prev * n_tile / count_new))


def _bn_apply_kernel(x_ref, scale_ref, shift_ref, o_ref):
    """Streaming pass 2: y = x * scale + shift (fully parallel sweep)."""
    x = x_ref[...].astype(jnp.float32)
    o_ref[...] = (x * scale_ref[...] + shift_ref[...]).astype(o_ref.dtype)


# ---------------------------------------------------------------------------
# Tile selection helpers
# ---------------------------------------------------------------------------

def _sublane_multiple(itemsize):
    """Native sublane tile multiple per dtype width (dtype-aware channel tiles)."""
    if itemsize >= 4:
        return 8
    if itemsize == 2:
        return 16
    return 32


def _c_tile_candidates(C, sublane):
    """Channel tiles satisfying the sublane rule: == C, or a multiple of `sublane`
    dividing C."""
    # TODO(synk): for awkward C with no sublane-multiple divisor, ragged channel
    # blocks (cdiv grid + masked edge) would give finer tiling; not implemented.
    cands = {C}
    d = sublane
    while d < C:
        if C % d == 0:
            cands.add(d)
        d += sublane
    return sorted(cands)


def _hw_tile_candidates(HW):
    """Spatial (lane) tiles: == HW, or a multiple of 128 dividing HW."""
    cands = {HW}
    d = 128
    while d < HW:
        if HW % d == 0:
            cands.add(d)
        d += 128
    return sorted(cands)


def _pick_fused_c_tile(fitting_cands, C):
    """Largest fitting channel tile that still gives >=4 (else >=2) grid steps,
    so both TensorCores get work and DMA/compute overlap; else the largest."""
    for min_steps in (4, 2):
        ok = [c for c in fitting_cands if C // c >= min_steps]
        if ok:
            return ok[-1]
    return fitting_cands[-1]


# ---------------------------------------------------------------------------
# Wrapper
# ---------------------------------------------------------------------------

def batchnorm2d_forward(x, gamma, beta, eps=1e-6, *, block_budget_bytes=None):
    """BatchNorm2d forward (training batch stats). x: (B,C,H,W); gamma/beta: (C,).

    Note: eps defaults to 1e-6 (wavehax); PyTorch nn.BatchNorm2d defaults to 1e-5.
    """
    B, C, H, W = x.shape
    HW = H * W
    inv_count = 1.0 / float(B * HW)
    itemsize = jnp.dtype(x.dtype).itemsize

    budget, vmem_limit, vmem_cap = _vmem_budget_and_limit()
    if block_budget_bytes is not None:
        budget = block_budget_bytes

    # Free (contiguous) reshapes -- no extra HBM transpose passes.
    x3 = x.reshape(B, C, HW)
    g3 = gamma.reshape(1, C, 1).astype(jnp.float32)
    b3 = beta.reshape(1, C, 1).astype(jnp.float32)

    sub = _sublane_multiple(itemsize)
    c_cands = _c_tile_candidates(C, sub)

    # Fused-path VMEM per channel: double-buffered in + out blocks plus the
    # in-kernel f32 working copy (one extra temp budgeted for sub-4-byte dtypes).
    f32_temp_bytes = 4 if itemsize >= 4 else 8
    fused_per_channel = B * HW * (4 * itemsize + f32_temp_bytes)
    fused_cands = [c for c in c_cands if c * fused_per_channel <= budget]

    if fused_cands:
        # ---------------- Fused single-pass path (2x HBM traffic) ----------------
        c_tile = _pick_fused_c_tile(fused_cands, C)
        grid = (C // c_tile,)
        out3 = pl.pallas_call(
            functools.partial(_bn_fused_kernel, eps=float(eps), inv_count=inv_count),
            out_shape=jax.ShapeDtypeStruct((B, C, HW), x.dtype),
            grid_spec=pltpu.PrefetchScalarGridSpec(
                num_scalar_prefetch=0,
                grid=grid,
                in_specs=[
                    pl.BlockSpec((B, c_tile, HW), lambda i: (0, i, 0)),
                    pl.BlockSpec((1, c_tile, 1), lambda i: (0, i, 0)),
                    pl.BlockSpec((1, c_tile, 1), lambda i: (0, i, 0)),
                ],
                out_specs=pl.BlockSpec((B, c_tile, HW), lambda i: (0, i, 0)),
            ),
            compiler_params=pltpu.CompilerParams(
                dimension_semantics=("parallel",),
                vmem_limit_bytes=vmem_limit,
            ),
            cost_estimate=pl.CostEstimate(
                flops=7 * B * C * HW,
                transcendentals=C,
                bytes_accessed=2 * B * C * HW * itemsize,
            ),
        )(x3, g3, b3)
        return out3.reshape(B, C, H, W)

    # ---------------- Streaming two-pass fallback (3x HBM traffic) ----------------
    hw_cands = _hw_tile_candidates(HW)
    # Pass 1 block working set: double-buffered input + f32 copy + centered copy.
    # Pass 2 block working set: double-buffered in + out + one f32 temp.
    per_elem = max(2 * itemsize + 8, 4 * itemsize + 4)

    def _fits(ct, nt):
        return ct * nt * per_elem <= budget

    # Maximize the contiguous lane (HW) axis first -- wide-lane blocks keep the
    # DMA chunks large and amortize per-step grid overhead -- then the channel axis.
    n_tile = hw_cands[0]
    for n in hw_cands:
        if _fits(c_cands[0], n):
            n_tile = n
    c_tile = c_cands[0]
    for c in c_cands:
        if _fits(c, n_tile):
            c_tile = c

    # Guard: if even the minimal block exceeds the budget (e.g. HW with no
    # 128-multiple divisor), raise the scoped-VMEM limit for this call (bounded
    # by physical VMEM) instead of silently compiling an over-limit block.
    block_bytes = c_tile * n_tile * per_elem
    if block_bytes > budget:
        needed = block_bytes + (4 << 20)
        ceiling = vmem_cap - (8 << 20)
        if needed > ceiling:
            raise ValueError(
                f"BatchNorm2d streaming block ({block_bytes} bytes) cannot fit VMEM "
                f"(capacity {vmem_cap} bytes); reduce the spatial extent or pad HW "
                f"to a multiple of 128.")
        vmem_limit = max(vmem_limit, min(needed, ceiling))

    grid = (C // c_tile, B, HW // n_tile)

    # Pass 1: per-channel mean / M2 accumulated directly in the f32 output blocks.
    mean3, m23 = pl.pallas_call(
        functools.partial(_bn_stats_kernel, n_tile=float(n_tile)),
        out_shape=(jax.ShapeDtypeStruct((1, C, 1), jnp.float32),
                   jax.ShapeDtypeStruct((1, C, 1), jnp.float32)),
        grid_spec=pltpu.PrefetchScalarGridSpec(
            num_scalar_prefetch=0,
            grid=grid,
            in_specs=[
                pl.BlockSpec((1, c_tile, n_tile), lambda c, b, n: (b, c, n)),
            ],
            out_specs=(
                pl.BlockSpec((1, c_tile, 1), lambda c, b, n: (0, c, 0)),
                pl.BlockSpec((1, c_tile, 1), lambda c, b, n: (0, c, 0)),
            ),
        ),
        compiler_params=pltpu.CompilerParams(
            dimension_semantics=("parallel", "arbitrary", "arbitrary"),
            vmem_limit_bytes=vmem_limit,
        ),
        cost_estimate=pl.CostEstimate(
            flops=4 * B * C * HW,
            transcendentals=0,
            bytes_accessed=B * C * HW * itemsize,
        ),
    )(x3)

    # Finalize on (C,)-sized arrays in plain JAX (negligible work).
    var3 = jnp.maximum(m23 * inv_count, 0.0)
    scale3 = g3 * jax.lax.rsqrt(var3 + float(eps))
    shift3 = b3 - mean3 * scale3

    # Pass 2: normalize (fully parallel elementwise sweep).
    out3 = pl.pallas_call(
        _bn_apply_kernel,
        out_shape=jax.ShapeDtypeStruct((B, C, HW), x.dtype),
        grid_spec=pltpu.PrefetchScalarGridSpec(
            num_scalar_prefetch=0,
            grid=grid,
            in_specs=[
                pl.BlockSpec((1, c_tile, n_tile), lambda c, b, n: (b, c, n)),
                pl.BlockSpec((1, c_tile, 1), lambda c, b, n: (0, c, 0)),
                pl.BlockSpec((1, c_tile, 1), lambda c, b, n: (0, c, 0)),
            ],
            out_specs=pl.BlockSpec((1, c_tile, n_tile), lambda c, b, n: (b, c, n)),
        ),
        compiler_params=pltpu.CompilerParams(
            dimension_semantics=("parallel", "parallel", "parallel"),
            vmem_limit_bytes=vmem_limit,
        ),
        cost_estimate=pl.CostEstimate(
            flops=2 * B * C * HW,
            transcendentals=0,
            bytes_accessed=2 * B * C * HW * itemsize,
        ),
    )(x3, scale3, shift3)
    return out3.reshape(B, C, H, W)


# ---------------------------------------------------------------------------
# Reference & test
# ---------------------------------------------------------------------------

def _reference(x, gamma, beta, eps=1e-6):
    mean = jnp.mean(x, axis=(0, 2, 3), keepdims=True)
    xc = x - mean
    var = jnp.mean(xc * xc, axis=(0, 2, 3), keepdims=True)
    y = xc / jnp.sqrt(var + eps)
    return gamma.reshape(1, -1, 1, 1) * y + beta.reshape(1, -1, 1, 1)


if __name__ == "__main__":
    key = jax.random.PRNGKey(0)
    B, C, H, W = 2, 4, 16, 16
    x = jax.random.normal(key, (B, C, H, W), dtype=jnp.float32)

    # Parameter init matching nn.Parameter(torch.ones/zeros(channels)).
    gamma = jnp.ones((C,), dtype=jnp.float32)
    beta = jnp.zeros((C,), dtype=jnp.float32)
    # TODO(synk): running_mean/running_var/num_batches_tracked buffer updates are
    # stateful training-time side effects; the forward output does not depend on them.

    # Fused single-pass path.
    out = jax.block_until_ready(batchnorm2d_forward(x, gamma, beta, eps=1e-6))
    ref = _reference(x, gamma, beta, eps=1e-6)
    assert out.shape == (B, C, H, W)
    assert jnp.allclose(out, ref, atol=2e-5, rtol=1e-4), "fused path mismatch"

    # Streaming two-pass fallback (forced via a tiny block budget).
    out2 = jax.block_until_ready(
        batchnorm2d_forward(x, gamma, beta, eps=1e-6, block_budget_bytes=1))
    assert jnp.allclose(out2, ref, atol=2e-5, rtol=1e-4), "streaming path mismatch"

    # Non-trivial affine params (checks scale/shift folding).
    kg, kb = jax.random.split(jax.random.PRNGKey(1))
    gamma2 = jax.random.normal(kg, (C,), dtype=jnp.float32)
    beta2 = jax.random.normal(kb, (C,), dtype=jnp.float32)
    out3 = jax.block_until_ready(batchnorm2d_forward(x, gamma2, beta2, eps=1e-6))
    ref3 = _reference(x, gamma2, beta2, eps=1e-6)
    assert jnp.allclose(out3, ref3, atol=2e-5, rtol=1e-4), "affine mismatch"

    print("KERNEL_OK")
</pallas_src>

<mosaic_0001>
module attributes {stable_mosaic.version = 11 : i64} {
  func.func @_bn_fused_kernel(%arg0: i32, %arg1: memref<2x4x256xf32, #tpu.memory_space<vmem>>, %arg2: memref<1x4x1xf32, #tpu.memory_space<vmem>>, %arg3: memref<1x4x1xf32, #tpu.memory_space<vmem>>, %arg4: memref<2x4x256xf32, #tpu.memory_space<vmem>>) attributes {dimension_semantics = [#tpu.dimension_semantics<parallel>], iteration_bounds = array<i64: 1>, scalar_prefetch = 0 : i64, scratch_operands = 0 : i64, tpu.core_type = #tpu.core_type<tc>, window_params = [{transform_indices = @transform_0, window_bounds = array<i64: 2, 4, 256>}, {transform_indices = @transform_1, window_bounds = array<i64: 1, 4, 1>}, {transform_indices = @transform_2, window_bounds = array<i64: 1, 4, 1>}, {transform_indices = @transform_3, window_bounds = array<i64: 2, 4, 256>}]} {
    %c0 = arith.constant 0 : index
    %c0_0 = arith.constant 0 : index
    %c0_1 = arith.constant 0 : index
    %0 = vector.load %arg1[%c0, %c0_0, %c0_1] : memref<2x4x256xf32, #tpu.memory_space<vmem>>, vector<2x4x256xf32>
    %cst = arith.constant dense<0.000000e+00> : vector<2x4xf32>
    %1 = vector.multi_reduction <add>, %0, %cst [2] : vector<2x4x256xf32> to vector<2x4xf32>
    %2 = vector.shape_cast %1 : vector<2x4xf32> to vector<2x4x1xf32>
    %cst_2 = arith.constant dense<0.000000e+00> : vector<4x1xf32>
    %3 = vector.multi_reduction <add>, %2, %cst_2 [0] : vector<2x4x1xf32> to vector<4x1xf32>
    %4 = vector.shape_cast %3 : vector<4x1xf32> to vector<1x4x1xf32>
    %5 = arith.mulf %0, %0 : vector<2x4x256xf32>
    %cst_3 = arith.constant dense<0.000000e+00> : vector<2x4xf32>
    %6 = vector.multi_reduction <add>, %5, %cst_3 [2] : vector<2x4x256xf32> to vector<2x4xf32>
    %7 = vector.shape_cast %6 : vector<2x4xf32> to vector<2x4x1xf32>
    %cst_4 = arith.constant dense<0.000000e+00> : vector<4x1xf32>
    %8 = vector.multi_reduction <add>, %7, %cst_4 [0] : vector<2x4x1xf32> to vector<4x1xf32>
    %9 = vector.shape_cast %8 : vector<4x1xf32> to vector<1x4x1xf32>
    %cst_5 = arith.constant 0.001953125 : f32
    %10 = vector.broadcast %cst_5 : f32 to vector<1x4x1xf32>
    %11 = arith.mulf %4, %10 : vector<1x4x1xf32>
    %cst_6 = arith.constant 0.001953125 : f32
    %12 = vector.broadcast %cst_6 : f32 to vector<1x4x1xf32>
    %13 = arith.mulf %9, %12 : vector<1x4x1xf32>
    %14 = arith.mulf %11, %11 : vector<1x4x1xf32>
    %15 = arith.subf %13, %14 : vector<1x4x1xf32>
    %cst_7 = arith.constant 0.000000e+00 : f32
    %16 = vector.broadcast %cst_7 : f32 to vector<1x4x1xf32>
    %17 = arith.maximumf %15, %16 : vector<1x4x1xf32>
    %c0_8 = arith.constant 0 : index
    %c0_9 = arith.constant 0 : index
    %c0_10 = arith.constant 0 : index
    %18 = vector.load %arg2[%c0_8, %c0_9, %c0_10] : memref<1x4x1xf32, #tpu.memory_space<vmem>>, vector<1x4x1xf32>
    %cst_11 = arith.constant 9.99999997E-7 : f32
    %19 = vector.broadcast %cst_11 : f32 to vector<1x4x1xf32>
    %20 = arith.addf %17, %19 : vector<1x4x1xf32>
    %21 = math.rsqrt %20 : vector<1x4x1xf32>
    %22 = arith.mulf %18, %21 : vector<1x4x1xf32>
    %c0_12 = arith.constant 0 : index
    %c0_13 = arith.constant 0 : index
    %c0_14 = arith.constant 0 : index
    %23 = vector.load %arg3[%c0_12, %c0_13, %c0_14] : memref<1x4x1xf32, #tpu.memory_space<vmem>>, vector<1x4x1xf32>
    %24 = arith.mulf %11, %22 : vector<1x4x1xf32>
    %25 = arith.subf %23, %24 : vector<1x4x1xf32>
    %26 = vector.broadcast %22 : vector<1x4x1xf32> to vector<2x4x256xf32>
    %27 = arith.mulf %0, %26 : vector<2x4x256xf32>
    %28 = vector.broadcast %25 : vector<1x4x1xf32> to vector<2x4x256xf32>
    %29 = arith.addf %27, %28 : vector<2x4x256xf32>
    %c0_15 = arith.constant 0 : index
    %c0_16 = arith.constant 0 : index
    %c0_17 = arith.constant 0 : index
    %30 = vector.load %arg4[%c0_15, %c0_16, %c0_17] : memref<2x4x256xf32, #tpu.memory_space<vmem>>, vector<2x4x256xf32>
    tpu.vector_store %arg4[%c0_15, %c0_16, %c0_17], %29 {strides = array<i32>} : memref<2x4x256xf32, #tpu.memory_space<vmem>>, vector<2x4x256xf32>,
    return
  }
  func.func @transform_0(%arg0: i32) -> (i32, i32, i32) {
    %c0_i32 = arith.constant 0 : i32
    %c0_i32_0 = arith.constant 0 : i32
    %c0_i32_1 = arith.constant 0 : i32
    return %c0_i32, %arg0, %c0_i32_0 : i32, i32, i32
  }
  func.func @transform_1(%arg0: i32) -> (i32, i32, i32) {
    %c0_i32 = arith.constant 0 : i32
    %c0_i32_0 = arith.constant 0 : i32
    %c0_i32_1 = arith.constant 0 : i32
    return %c0_i32, %arg0, %c0_i32_0 : i32, i32, i32
  }
  func.func @transform_2(%arg0: i32) -> (i32, i32, i32) {
    %c0_i32 = arith.constant 0 : i32
    %c0_i32_0 = arith.constant 0 : i32
    %c0_i32_1 = arith.constant 0 : i32
    return %c0_i32, %arg0, %c0_i32_0 : i32, i32, i32
  }
  func.func @transform_3(%arg0: i32) -> (i32, i32, i32) {
    %c0_i32 = arith.constant 0 : i32
    %c0_i32_0 = arith.constant 0 : i32
    %c0_i32_1 = arith.constant 0 : i32
    return %c0_i32, %arg0, %c0_i32_0 : i32, i32, i32
  }
}

</mosaic_0001>

<bundles_post_ra>
// kernel: tpu_custom_call.1
= control target key start
LH: loop header
LB: loop body
LE: loop exit
PB: predicated region body
PF: predicated region fallthrough
CT: control target
= control target key end

     0   :  { %8 = vsyncpa [#allocation3], 0  ;;  %s281_s0 = inlined_call_operand.hbm [shape: f32[2,4,256], index: 0, kind: input, shape index: {}]   ;;  %s282_s1 = inlined_call_operand.vmem [shape: f32[1,4,1], index: 1, kind: input, shape index: {}]   ;;  %s283_s2 = inlined_call_operand.vmem [shape: f32[1,4,1], index: 2, kind: input, shape index: {}]   ;;  %s284_s3 = inlined_call_operand.hbm [shape: f32[2,4,256], index: 3, kind: output, shape index: {}]  }
   0x1   :  { %9 = vsyncpa [#allocation4], 0  ;;  %s191_s12 = smov [#allocation2]   ;;  %s143_s16 = scalar_lea.hbm %s281_s0, 256 }
   0x2   :  { %s15_s13 = sshll.u32 %s191_s12, 4  ;;  %p144_p0 = scmp.ne.s32.totalorder %s281_s0, %s143_s16  ;;  %s16_s13 = int_to_ptr.vmem [resolvable:$true] %s15_s13 }
   0x3   :  { %p147_p1 = scmp.lt.u32.totalorder %s143_s16, %s281_s0 }
   0x5   :  { %p149_p2 = pnand %p147_p1, %p144_p0 }
   0x7   :  { %152 = shalt.err (!%p149_p2)
}
   0x8   :  { %s153_s21 = scalar_lea.vmem %s16_s13, 256  ;;  %p158_p4 = scmp.lt.s32.totalorder %s16_s13, %s16_s13 }
   0x9   :  { %p154_p3 = scmp.ne.s32.totalorder %s16_s13, %s153_s21  ;;  %p159_p5 = scmp.lt.s32.totalorder %s153_s21, %s153_s21 }
   0xb   :  { %p160_p6 = por %p159_p5, %p158_p4 }
   0xd   :  { %p161_p7 = pnand %p160_p6, %p154_p3 }
   0xf   :  { %164 = shalt.err (!%p161_p7)
}
  0x10   :  { %s192_s22 = smov 128   ;;  %s193_s23 = smov 8  }
  0x11   :  { %21 = dma.hbm_to_vmem [thread:$0]  %s281_s0, 256, %s16_s13, [#allocation3], %s192_s22, %s192_s22, %s193_s23  }
  0x12   :  { %187 = dma.done.wait [#allocation3], 256  }
  0x13   :  { %188 = vsyncadd [#allocation3], 4294967040  ;;  %vm37_vm0 = vcmask 1043456   ;;  %v232_v0 = vld [vmem:[#allocation2] sm:$0xff]  ;;  %v234_v1 = vld [vmem:[#allocation2 + $0x8] sm:$0xff]  ;;  %v194_v20 = vmov 0   ;;  %v91_v45 = vlaneseq }
  0x14   :  { %v33_v2 = vcombine.high %v232_v0, %v232_v0  ;;  %v38_v3 = vsel %vm37_vm0, %v232_v0, 0.0  ;;  %v51_v4 = vmul.f32 %v232_v0, %v232_v0  ;;  %v34_v5 = vcombine.high %v234_v1, %v234_v1  ;;  %137 = vset.pattern.permute.xlu0 %v194_v20  ;;  %138 = vset.pattern.permute.xlu1 %v194_v20  ;;  %v77_v37 = vld [vmem:[%s282_s1] sm:$0xf]  ;;  %s196_s1 = smov [#allocation5]  }
  0x15   :  { %v43_v6 = vsel %vm37_vm0, %v234_v1, 0.0  ;;  %v52_v7 = vmul.f32 %v234_v1, %v234_v1  ;;  %v81_v40 = vld [vmem:[%s283_s2] sm:$0xf]  ;;  %v195_v43 = vmov 839922192   ;;  %v92_v47 = vshrl.u32 %v91_v45, 7 }
  0x16   :  { %v39_v8 = vsel %vm37_vm0, %v33_v2, 0.0  ;;  %v55_v9 = vcombine.high %v51_v4, %v51_v4  ;;  %v59_v10 = vsel %vm37_vm0, %v51_v4, 0.0  ;;  %v44_v11 = vsel %vm37_vm0, %v34_v5, 0.0  ;;  %s119_s29 = sshll.u32 %s196_s1, 4  ;;  %s120_s29 = int_to_ptr.vmem [resolvable:$true] %s119_s29 }
  0x17   :  { %v40_v12 = vadd.f32 %v39_v8, %v38_v3  ;;  %v56_v13 = vcombine.high %v52_v7, %v52_v7  ;;  %v64_v15 = vsel %vm37_vm0, %v52_v7, 0.0  ;;  %v45_v17 = vadd.f32 %v44_v11, %v43_v6  ;;  %s165_s2 = scalar_lea.vmem %s120_s29, 256  ;;  %p170_p9 = scmp.lt.s32.totalorder %s120_s29, %s120_s29 }
  0x18   :  { %v60_v14 = vsel %vm37_vm0, %v55_v9, 0.0  ;;  %v89_v44 = vunpack.c.l.s4 %v195_v43  ;;  %p166_p8 = scmp.ne.s32.totalorder %s120_s29, %s165_s2  ;;  %p171_p10 = scmp.lt.s32.totalorder %s165_s2, %s165_s2 }
  0x19   :  { %41 = vadd.xlane.f32.xlu0 %v40_v12  ;;  %v61_v16 = vadd.f32 %v60_v14, %v59_v10  ;;  %v65_v18 = vsel %vm37_vm0, %v56_v13, 0.0 }
  0x1a   :  { %v66_v19 = vadd.f32 %v65_v18, %v64_v15  ;;  %v90_v46 = vunpack.c.0.s8 %v89_v44  ;;  %p172_p11 = por %p171_p10, %p170_p9 }
  0x1b   :  { %62 = vadd.xlane.f32.xlu1 %v61_v16 }
  0x1c   :  { %v93_v48 = vsub.s32 %v90_v46, %v92_v47  ;;  %p173_p12 = pnand %p172_p11, %p166_p8 }
  0x1d   :  { %46 = vadd.xlane.f32.xlu0 %v45_v17 }
  0x1f   :  { %67 = vadd.xlane.f32.xlu1 %v66_v19 }
  0xa6   :  { %v42_v21 = vpop.xlane.xlu0 %41 }
  0xa7   :  { %v48_v24 = vsel %vm37_vm0, %v42_v21, 0.0 }
  0xa8   :  { %v63_v22 = vpop.xlane.xlu1 %62 }
  0xa9   :  { %v69_v28 = vsel %vm37_vm0, %v63_v22, 0.0 }
  0xaa   :  { %v47_v23 = vpop.xlane.xlu0 %46 }
  0xab   :  { %v49_v25 = vsel %vm37_vm0, %v47_v23, 0.0 }
  0xac   :  { %v50_v26 = vadd.f32 %v49_v25, %v48_v24  ;;  %v68_v27 = vpop.xlane.xlu1 %67 }
  0xad   :  { %v70_v29 = vsel %vm37_vm0, %v68_v27, 0.0 }
  0xae   :  { %v72_v30 = vmul.f32 0.001953125, %v50_v26  ;;  %v71_v31 = vadd.f32 %v70_v29, %v69_v28 }
  0xb0   :  { %v74_v32 = vmul.f32 %v72_v30, %v72_v30  ;;  %v73_v33 = vmul.f32 0.001953125, %v71_v31 }
  0xb2   :  { %v75_v34 = vsub.f32 %v73_v33, %v74_v32 }
  0xb4   :  { %v76_v35 = vmax.f32 %v75_v34, 0.0 }
  0xb6   :  { %v78_v36 = vadd.f32 1e-06, %v76_v35 }
  0xb8   :  { %141 = vrsqrt.f32 %v78_v36 }
  0xc2   :  { %v142_v38 = vpop.eup %141 }
  0xc3   :  { %v80_v39 = vmul.f32 %v142_v38, %v77_v37 }
  0xc5   :  { %86 = vperm.xlu0 %137, %v80_v39   ;;  %v82_v41 = vmul.f32 %v80_v39, %v72_v30 }
  0xc7   :  { %v83_v42 = vsub.f32 %v81_v40, %v82_v41 }
  0xc9   :  { %100 = vperm.xlu1 %138, %v83_v42  }
 0x144   :  { %v87_v49 = vpop.permute.xlu0 %86 }
 0x145   :  { %v94_v50 = vrot.slane %v87_v49, %v93_v48 }
 0x147   :  { %v96_v52 = vmul.f32 %v94_v50, %v232_v0  ;;  %v97_v53 = vmul.f32 %v94_v50, %v234_v1 }
 0x148   :  { %v101_v51 = vpop.permute.xlu1 %100 }
 0x149   :  { %v108_v54 = vrot.slane %v101_v51, %v93_v48 }
 0x14b   :  { %v110_v55 = vadd.f32 %v108_v54, %v96_v52  ;;  %v111_v56 = vadd.f32 %v108_v54, %v97_v53 }
 0x14d   :  { %112 = vst [vmem:[#allocation5] sm:$0xff] %v110_v55  ;;  %113 = vst [vmem:[#allocation5 + $0x8] sm:$0xff] %v111_v56 }
 0x14e   :  { %176 = shalt.err (!%p173_p12)
}
 0x14f   :  { %s177_s5 = scalar_lea.hbm %s284_s3, 256 }
 0x150   :  { %p178_p13 = scmp.ne.s32.totalorder %s284_s3, %s177_s5  ;;  %p181_p0 = scmp.lt.u32.totalorder %s177_s5, %s284_s3 }
 0x152   :  { %p183_p1 = pnand %p181_p0, %p178_p13 }
 0x154   :  { %186 = shalt.err (!%p183_p1)
}
 0x155   :  { %125 = dma.vmem_to_hbm [thread:$0]  %s120_s29, 256, %s284_s3, [#allocation4], %s192_s22, %s192_s22, %s193_s23  }
 0x156   :  { %189 = dma.done.wait [#allocation4], 256  }
 0x157   :  { %190 = vsyncadd [#allocation4], 4294967040 }
 0x158   :  { %129 = vsyncpa [#allocation3], 1 }
 0x159   :  { %130 = vsyncpa [#allocation4], 1 }

</bundles_post_ra>
